<compile_context>
chip_gen: v5e
topology: v5e:2x2
jax: 0.10.0
libtpu: 0.0.40
codegen_flags: <defaults>
</compile_context>

<pallas_src>
import jax
import jax.numpy as jnp
from jax import lax
from jax.experimental import pallas as pl
from jax.experimental.pallas import tpu as pltpu

S_SCALE = 30.0
M_LARGE = 0.4
M_SMALL = 0.1
C_PAD = 128          # lane-dense class dimension
_M_TABLE_LEN = 5     # the PyTorch module's margin table has 5 entries


def _make_kernel(num_classes, n_true, block_n, use_bf16_matmul):
    """Builds the kernel body; shapes / flags are baked in at trace time."""

    def kernel(lab_ref, x_ref, w_ref, out_ref):
        pid = pl.program_id(0)

        x = x_ref[...]          # (BLOCK_N, D)  f32
        w = w_ref[...]          # (C_PAD, D)    f32, zero rows beyond num_classes
        lab = lab_ref[...]      # (BLOCK_N, 1)  i32

        # x = F.normalize(x, dim=1): x / max(||x||, 1e-12) == x * rsqrt(max(|x|^2, 1e-24))
        sumsq = jnp.sum(x * x, axis=1, keepdims=True)
        x_n = x * lax.rsqrt(jnp.maximum(sumsq, 1e-24))

        # wf = fc(x) = x_n @ W.T  (weights intentionally NOT normalized)
        if use_bf16_matmul:
            wf = lax.dot_general(x_n.astype(jnp.bfloat16), w.astype(jnp.bfloat16),
                                 (((1,), (1,)), ((), ())),
                                 preferred_element_type=jnp.float32)
        else:
            wf = lax.dot_general(x_n, w, (((1,), (1,)), ((), ())),
                                 preferred_element_type=jnp.float32)  # (BLOCK_N, C_PAD)

        col = lax.broadcasted_iota(jnp.int32, (block_n, C_PAD), 1)
        is_label = col == lab                    # (BLOCK_N, C_PAD)
        valid_col = col < num_classes            # mask out the padded class columns

        # numerator = s * (wf[i, y_i] - m[y_i]),  m = m_s if y_i == 0 else m_l
        diag = jnp.sum(jnp.where(is_label, wf, 0.0), axis=1, keepdims=True)  # (BLOCK_N, 1)
        m_i = jnp.where(lab == 0, M_SMALL, M_LARGE).astype(jnp.float32)      # (BLOCK_N, 1)
        numerator = S_SCALE * (diag - m_i)

        # denominator = exp(numerator) + sum_{j != y_i, j < C} exp(s * wf[i, j])
        # (no LSE shift -> matches the PyTorch module's numerics exactly)
        p = jnp.exp(S_SCALE * wf)
        excl_mask = jnp.logical_and(valid_col, jnp.logical_not(is_label))
        excl = jnp.sum(jnp.where(excl_mask, p, 0.0), axis=1, keepdims=True)
        denominator = jnp.exp(numerator) + excl

        L = numerator - jnp.log(denominator)                                 # (BLOCK_N, 1)

        # Mask padded batch rows (x was zero-padded up to a BLOCK_N multiple).
        row = lax.broadcasted_iota(jnp.int32, (block_n, 1), 0) + pid * block_n
        L = jnp.where(row < n_true, L, 0.0)

        # Per-block partial sum, broadcast to a lane-dense (1, 8, 128) block so the
        # store is an unmasked vst and each grid step owns a distinct output block
        # (enables "parallel" semantics / megacore sharding on v7x).
        partial = jnp.sum(L)
        out_ref[...] = jnp.broadcast_to(partial, (1, 8, 128)).astype(jnp.float32)

    return kernel


def _pick_block_n(n, d, vmem_budget_bytes=24 * 1024 * 1024):
    """Largest batch tile (multiple of 8, <= 512) whose pipelined f32 footprint fits
    the budget. 24 MiB leaves headroom inside v7x's 32 MiB default scoped VMEM limit
    (v5e / v6e have far more physical VMEM, so the same choice is safe there)."""
    tn = 512
    while tn > 8:
        need = (2 * tn * d * 4          # x block, double-buffered
                + 2 * C_PAD * d * 4     # resident W (allocated double-buffered)
                + 6 * tn * C_PAD * 4)   # (BLOCK_N, 128) f32 intermediates headroom
        if need <= vmem_budget_bytes:
            break
        tn //= 2
    tn = max(tn, 8)
    n_rounded = ((n + 7) // 8) * 8
    return min(tn, n_rounded)


def admsoftmax_loss(x, labels_onehot, weight, *, block_n=None, use_bf16_matmul=False):
    """x: (N, D), labels_onehot: (N, C), weight: (C, D) -> scalar f32 loss.

    Set use_bf16_matmul=True on v6e/v7x to feed the MXU bf16 operands (~2x matmul
    throughput, ~1e-3 deviation from the f32 PyTorch forward)."""
    x = jnp.asarray(x, jnp.float32)
    weight = jnp.asarray(weight, jnp.float32)
    n, d = x.shape
    c = weight.shape[0]
    if c > _M_TABLE_LEN:
        raise ValueError(f"module's margin table has {_M_TABLE_LEN} entries; got {c} classes")

    # labels = argmax(labels, dim=1): done here so the kernel streams int32 indices
    # instead of a dense (N, C) one-hot.
    labels = jnp.argmax(labels_onehot, axis=1).astype(jnp.int32)

    if block_n is None:
        block_n = _pick_block_n(n, d)
    block_n = max(8, (block_n // 8) * 8)

    n_pad = ((n + block_n - 1) // block_n) * block_n
    num_blocks = n_pad // block_n

    x_p = jnp.zeros((n_pad, d), jnp.float32).at[:n].set(x)
    lab_p = jnp.zeros((n_pad, 1), jnp.int32).at[:n, 0].set(labels)
    # Lane-dense class dim: pad W with zero rows to 128; padded columns are masked
    # out of the excl-sum inside the kernel.
    w_p = jnp.zeros((C_PAD, d), jnp.float32).at[:c].set(weight)

    kernel = _make_kernel(c, n, block_n, use_bf16_matmul)

    partials = pl.pallas_call(
        kernel,
        out_shape=jax.ShapeDtypeStruct((num_blocks, 8, 128), jnp.float32),
        grid_spec=pltpu.PrefetchScalarGridSpec(
            num_scalar_prefetch=0,
            grid=(num_blocks,),
            in_specs=[
                pl.BlockSpec((block_n, 1), lambda i: (i, 0)),     # labels (streamed)
                pl.BlockSpec((block_n, d), lambda i: (i, 0)),     # x      (streamed)
                pl.BlockSpec((C_PAD, d), lambda i: (0, 0)),       # W      (resident)
            ],
            out_specs=pl.BlockSpec((1, 8, 128), lambda i: (i, 0, 0)),  # per-block partial
        ),
        # Each grid step writes its own output block -> batch axis is truly parallel
        # (megacore-shardable on v7x; harmless elsewhere).
        compiler_params=pltpu.CompilerParams(dimension_semantics=("parallel",)),
    )(lab_p, x_p, w_p)

    # Final reduction over the (few) per-block partials + the -mean scaling: tiny,
    # done in plain XLA outside the kernel.
    return -jnp.sum(partials[:, 0, 0]) / jnp.float32(n)


def admsoftmax_loss_ref(x, labels_onehot, weight):
    """Plain-JAX reference mirroring the PyTorch forward."""
    labels = jnp.argmax(labels_onehot, axis=1)
    x_n = x / jnp.maximum(jnp.linalg.norm(x, axis=1, keepdims=True), 1e-12)
    wf = x_n @ weight.T
    m_full = jnp.array([M_SMALL, M_LARGE, M_LARGE, M_LARGE, M_LARGE], dtype=jnp.float32)
    m = m_full[labels]
    diag = wf[jnp.arange(x.shape[0]), labels]
    numerator = S_SCALE * (diag - m)
    onehot = jax.nn.one_hot(labels, weight.shape[0], dtype=jnp.float32)
    excl = jnp.sum(jnp.exp(S_SCALE * wf) * (1.0 - onehot), axis=1)
    denominator = jnp.exp(numerator) + excl
    L = numerator - jnp.log(denominator)
    return -jnp.mean(L)


if __name__ == "__main__":
    IN_FEATURES = 32
    OUT_FEATURES = 5  # the module's margin table has 5 entries

    def run_case(key, n, block_n=None):
        kx, kw, kl = jax.random.split(key, 3)
        x = jax.random.normal(kx, (n, IN_FEATURES), dtype=jnp.float32)
        # nn.Linear(in, out, bias=False) weight: (out, in), uniform(-1/sqrt(in), 1/sqrt(in)).
        bound = 1.0 / (IN_FEATURES ** 0.5)
        weight = jax.random.uniform(kw, (OUT_FEATURES, IN_FEATURES),
                                    minval=-bound, maxval=bound, dtype=jnp.float32)
        labels_int = jax.random.randint(kl, (n,), 0, OUT_FEATURES)
        labels_onehot = jax.nn.one_hot(labels_int, OUT_FEATURES, dtype=jnp.float32)

        loss = jax.block_until_ready(
            admsoftmax_loss(x, labels_onehot, weight, block_n=block_n))
        ref = admsoftmax_loss_ref(x, labels_onehot, weight)
        assert jnp.allclose(loss, ref, rtol=1e-5, atol=1e-5), (loss, ref)
        return loss

    key0, key1 = jax.random.split(jax.random.PRNGKey(0))
    run_case(key0, 8)               # single-block path
    run_case(key1, 20, block_n=8)   # multi-block parallel grid + row padding/masking

    print("KERNEL_OK")
</pallas_src>

<mosaic_0001>
module attributes {stable_mosaic.version = 11 : i64} {
  func.func @kernel(%arg0: i32, %arg1: memref<8x1xi32, #tpu.memory_space<vmem>>, %arg2: memref<8x32xf32, #tpu.memory_space<vmem>>, %arg3: memref<128x32xf32, #tpu.memory_space<vmem>>, %arg4: memref<1x8x128xf32, #tpu.memory_space<vmem>>) attributes {dimension_semantics = [#tpu.dimension_semantics<parallel>], iteration_bounds = array<i64: 1>, scalar_prefetch = 0 : i64, scratch_operands = 0 : i64, tpu.core_type = #tpu.core_type<tc>, window_params = [{transform_indices = @transform_0, window_bounds = array<i64: 8, 1>}, {transform_indices = @transform_1, window_bounds = array<i64: 8, 32>}, {pipeline_mode = #tpu.pipeline_mode<synchronous>, transform_indices = @transform_2, window_bounds = array<i64: 128, 32>}, {transform_indices = @transform_3, window_bounds = array<i64: 1, 8, 128>}]} {
    %c0 = arith.constant 0 : index
    %c0_0 = arith.constant 0 : index
    %0 = vector.load %arg2[%c0, %c0_0] : memref<8x32xf32, #tpu.memory_space<vmem>>, vector<8x32xf32>
    %c0_1 = arith.constant 0 : index
    %c0_2 = arith.constant 0 : index
    %1 = vector.load %arg3[%c0_1, %c0_2] : memref<128x32xf32, #tpu.memory_space<vmem>>, vector<128x32xf32>
    %c0_3 = arith.constant 0 : index
    %c0_4 = arith.constant 0 : index
    %2 = vector.load %arg1[%c0_3, %c0_4] : memref<8x1xi32, #tpu.memory_space<vmem>>, vector<8x1xi32>
    %3 = arith.mulf %0, %0 : vector<8x32xf32>
    %cst = arith.constant dense<0.000000e+00> : vector<8xf32>
    %4 = vector.multi_reduction <add>, %3, %cst [1] : vector<8x32xf32> to vector<8xf32>
    %5 = vector.shape_cast %4 : vector<8xf32> to vector<8x1xf32>
    %cst_5 = arith.constant 1.000000e-24 : f32
    %6 = vector.broadcast %cst_5 : f32 to vector<8x1xf32>
    %7 = arith.maximumf %5, %6 : vector<8x1xf32>
    %8 = math.rsqrt %7 : vector<8x1xf32>
    %9 = vector.broadcast %8 : vector<8x1xf32> to vector<8x32xf32>
    %10 = arith.mulf %0, %9 : vector<8x32xf32>
    %cst_6 = arith.constant dense<0.000000e+00> : vector<8x128xf32>
    %11 = tpu.matmul %10, %1, %cst_6 {dimension_numbers = #tpu.dot_dimension_numbers<[1], [1], [0], [0], [0, 0, 1, 0], [], []>} : vector<8x32xf32>, vector<128x32xf32>, vector<8x128xf32> -> vector<8x128xf32>
    %12 = tpu.iota {dimensions = array<i32: 1>} : vector<8x128xi32>
    %13 = vector.broadcast %2 : vector<8x1xi32> to vector<8x128xi32>
    %14 = arith.cmpi eq, %12, %13 : vector<8x128xi32>
    %c5_i32 = arith.constant 5 : i32
    %15 = vector.broadcast %c5_i32 : i32 to vector<8x128xi32>
    %16 = arith.cmpi slt, %12, %15 : vector<8x128xi32>
    %cst_7 = arith.constant 0.000000e+00 : f32
    %17 = vector.broadcast %cst_7 : f32 to vector<8x128xf32>
    %18 = arith.select %14, %11, %17 : vector<8x128xi1>, vector<8x128xf32>
    %cst_8 = arith.constant dense<0.000000e+00> : vector<8xf32>
    %19 = vector.multi_reduction <add>, %18, %cst_8 [1] : vector<8x128xf32> to vector<8xf32>
    %20 = vector.shape_cast %19 : vector<8xf32> to vector<8x1xf32>
    %c0_i32 = arith.constant 0 : i32
    %21 = vector.broadcast %c0_i32 : i32 to vector<8x1xi32>
    %22 = arith.cmpi eq, %2, %21 : vector<8x1xi32>
    %cst_9 = arith.constant 1.000000e-01 : f32
    %cst_10 = arith.constant 4.000000e-01 : f32
    %23 = vector.broadcast %cst_9 : f32 to vector<8x1xf32>
    %24 = vector.broadcast %cst_10 : f32 to vector<8x1xf32>
    %25 = arith.select %22, %23, %24 : vector<8x1xi1>, vector<8x1xf32>
    %26 = arith.subf %20, %25 : vector<8x1xf32>
    %cst_11 = arith.constant 3.000000e+01 : f32
    %27 = vector.broadcast %cst_11 : f32 to vector<8x1xf32>
    %28 = arith.mulf %27, %26 : vector<8x1xf32>
    %cst_12 = arith.constant 3.000000e+01 : f32
    %29 = vector.broadcast %cst_12 : f32 to vector<8x128xf32>
    %30 = arith.mulf %29, %11 : vector<8x128xf32>
    %31 = math.exp %30 : vector<8x128xf32>
    %cst_13 = arith.constant dense<true> : vector<8x128xi1>
    %32 = arith.xori %14, %cst_13 : vector<8x128xi1>
    %33 = arith.andi %16, %32 : vector<8x128xi1>
    %cst_14 = arith.constant 0.000000e+00 : f32
    %34 = vector.broadcast %cst_14 : f32 to vector<8x128xf32>
    %35 = arith.select %33, %31, %34 : vector<8x128xi1>, vector<8x128xf32>
    %cst_15 = arith.constant dense<0.000000e+00> : vector<8xf32>
    %36 = vector.multi_reduction <add>, %35, %cst_15 [1] : vector<8x128xf32> to vector<8xf32>
    %37 = vector.shape_cast %36 : vector<8xf32> to vector<8x1xf32>
    %38 = math.exp %28 : vector<8x1xf32>
    %39 = arith.addf %38, %37 : vector<8x1xf32>
    %40 = math.log %39 : vector<8x1xf32>
    %41 = arith.subf %28, %40 : vector<8x1xf32>
    %42 = tpu.iota {dimensions = array<i32: 0>} : vector<8x1xi32>
    %c8_i32 = arith.constant 8 : i32
    %43 = arith.muli %arg0, %c8_i32 : i32
    %44 = vector.broadcast %43 : i32 to vector<8x1xi32>
    %45 = arith.addi %42, %44 : vector<8x1xi32>
    %c8_i32_16 = arith.constant 8 : i32
    %46 = vector.broadcast %c8_i32_16 : i32 to vector<8x1xi32>
    %47 = arith.cmpi slt, %45, %46 : vector<8x1xi32>
    %cst_17 = arith.constant 0.000000e+00 : f32
    %48 = vector.broadcast %cst_17 : f32 to vector<8x1xf32>
    %49 = arith.select %47, %41, %48 : vector<8x1xi1>, vector<8x1xf32>
    %50 = vector.shape_cast %49 : vector<8x1xf32> to vector<1x8x1xf32>
    %cst_18 = arith.constant dense<0.000000e+00> : vector<1xf32>
    %51 = vector.multi_reduction <add>, %50, %cst_18 [1, 2] : vector<1x8x1xf32> to vector<1xf32>
    %52 = vector.shape_cast %51 : vector<1xf32> to vector<1x1x1xf32>
    %53 = vector.extract %52[0, 0, 0] : f32 from vector<1x1x1xf32>
    %54 = vector.broadcast %53 : f32 to vector<1x8x128xf32>
    %c0_19 = arith.constant 0 : index
    %c0_20 = arith.constant 0 : index
    %c0_21 = arith.constant 0 : index
    %55 = vector.load %arg4[%c0_19, %c0_20, %c0_21] : memref<1x8x128xf32, #tpu.memory_space<vmem>>, vector<1x8x128xf32>
    tpu.vector_store %arg4[%c0_19, %c0_20, %c0_21], %54 {strides = array<i32>} : memref<1x8x128xf32, #tpu.memory_space<vmem>>, vector<1x8x128xf32>,
    return
  }
  func.func @transform_0(%arg0: i32) -> (i32, i32) {
    %c0_i32 = arith.constant 0 : i32
    %c0_i32_0 = arith.constant 0 : i32
    return %arg0, %c0_i32 : i32, i32
  }
  func.func @transform_1(%arg0: i32) -> (i32, i32) {
    %c0_i32 = arith.constant 0 : i32
    %c0_i32_0 = arith.constant 0 : i32
    return %arg0, %c0_i32 : i32, i32
  }
  func.func @transform_2(%arg0: i32) -> (i32, i32) {
    %c0_i32 = arith.constant 0 : i32
    %c0_i32_0 = arith.constant 0 : i32
    %c0_i32_1 = arith.constant 0 : i32
    return %c0_i32, %c0_i32_0 : i32, i32
  }
  func.func @transform_3(%arg0: i32) -> (i32, i32, i32) {
    %c0_i32 = arith.constant 0 : i32
    %c0_i32_0 = arith.constant 0 : i32
    %c0_i32_1 = arith.constant 0 : i32
    return %arg0, %c0_i32, %c0_i32_0 : i32, i32, i32
  }
}

</mosaic_0001>

<bundles_post_ra>
// kernel: tpu_custom_call.1
= control target key start
LH: loop header
LB: loop body
LE: loop exit
PB: predicated region body
PF: predicated region fallthrough
CT: control target
= control target key end

     0   :  { %vm34_vm0 = vcmask 261120   ;;  %s342_s0 = inlined_call_operand.vmem [shape: s32[8,1], index: 0, kind: input, shape index: {}]   ;;  %s343_s1 = inlined_call_operand.vmem [shape: f32[8,32], index: 1, kind: input, shape index: {}]   ;;  %s344_s2 = inlined_call_operand.vmem [shape: f32[128,32], index: 2, kind: input, shape index: {}]   ;;  %s345_s3 = inlined_call_operand.hbm [shape: f32[1,8,128], index: 3, kind: output, shape index: {}]  }
   0x1   :  { %v15_v0 = vld [vmem:[%s343_s1] sm:$0xff]  ;;  %v31_v1 = vld [vmem:[%s344_s2 + $0x78] sm:$0xff]  ;;  %v30_v3 = vld [vmem:[%s344_s2 + $0x70] sm:$0xff] }
   0x2   :  { %v33_v2 = vmul.f32 %v15_v0, %v15_v0  ;;  %185 = vmatpush.xpose.msk.msra.mxu0 %vm34_vm0, %v31_v1 }
   0x4   :  { %v35_v4 = vsel %vm34_vm0, %v33_v2, 0.0 }
   0x5   :  { %8 = vsyncpa [#allocation3], 0  ;;  %36 = vadd.xlane.f32.xlu0 %v35_v4  ;;  %v29_v5 = vld [vmem:[%s344_s2 + $0x68] sm:$0xff]  ;;  %v28_v6 = vld [vmem:[%s344_s2 + $0x60] sm:$0xff]  ;;  %v243_v20 = vmov 0   ;;  %v121_v31 = vlaneseq  ;;  %vm244_vm5 = vmmov 1  }
   0x6   :  { %186 = vmatpush.xpose.msk.msra.mxu0 %vm34_vm0, %v30_v3  ;;  %v27_v7 = vld [vmem:[%s344_s2 + $0x58] sm:$0xff]  ;;  %v26_v8 = vld [vmem:[%s344_s2 + $0x50] sm:$0xff]  ;;  %v25_v9 = vld [vmem:[%s344_s2 + $0x48] sm:$0xff]  ;;  %208 = vset.pattern.permute.xlu0 %v243_v20  ;;  %v245_v40 = vmov 0.4   ;;  %vm156_vm10 = vcmask 7168  }
   0x7   :  { %v24_v10 = vld [vmem:[%s344_s2 + $0x40] sm:$0xff]  ;;  %v23_v11 = vld [vmem:[%s344_s2 + $0x38] sm:$0xff]  ;;  %v22_v12 = vld [vmem:[%s344_s2 + $0x30] sm:$0xff]  ;;  %v122_v32 = vand.u32 127, %v121_v31  ;;  %s176_s21 = sshll.u32 %s345_s3, 4  ;;  %s177_s21 = int_to_ptr.hbm [resolvable:$true] %s176_s21 }
   0x8   :  { %v21_v13 = vld [vmem:[%s344_s2 + $0x28] sm:$0xff]  ;;  %v20_v14 = vld [vmem:[%s344_s2 + $0x20] sm:$0xff]  ;;  %v19_v15 = vld [vmem:[%s344_s2 + $0x18] sm:$0xff] }
   0x9   :  { %v18_v16 = vld [vmem:[%s344_s2 + $0x10] sm:$0xff]  ;;  %v17_v17 = vld [vmem:[%s344_s2 + $0x8] sm:$0xff]  ;;  %v16_v18 = vld [vmem:[%s344_s2] sm:$0xff]  ;;  %vm127_vm7 = vcmp.lt.s32.totalorder %v122_v32, 5 }
   0xa   :  { %187 = vmatpush.xpose.msk.msra.mxu0 %vm34_vm0, %v29_v5  ;;  %v32_v19 = vld [vmem:[%s342_s0] sm:$0xff]  ;;  %s246_s0 = smov [#allocation2]  }
   0xb   :  { %vm131_vm9 = vcmp.eq.s32.totalorder %v32_v19, 0  ;;  %s174_s2 = sshll.u32 %s246_s0, 4  ;;  %s175_s2 = int_to_ptr.vmem [resolvable:$true] %s174_s2 }
   0xc   :  { %v132_v41 = vsel %vm131_vm9, 0.1, %v245_v40 }
   0xe   :  { %188 = vmatpush.xpose.msk.msra.mxu0 %vm34_vm0, %v28_v6 }
  0x12   :  { %189 = vmatpush.xpose.msk.msra.mxu0 %vm34_vm0, %v27_v7 }
  0x16   :  { %190 = vmatpush.xpose.msk.msra.mxu0 %vm34_vm0, %v26_v8 }
  0x19   :  { %124 = vperm.xlu0 %208, %v32_v19  }
  0x1a   :  { %191 = vmatpush.xpose.msk.msra.mxu0 %vm34_vm0, %v25_v9 }
  0x1e   :  { %192 = vmatpush.xpose.msk.msra.mxu0 %vm34_vm0, %v24_v10 }
  0x22   :  { %193 = vmatpush.xpose.msk.msra.mxu0 %vm34_vm0, %v23_v11 }
  0x26   :  { %194 = vmatpush.xpose.msk.msra.mxu0 %vm34_vm0, %v22_v12 }
  0x2a   :  { %195 = vmatpush.xpose.msk.msra.mxu0 %vm34_vm0, %v21_v13 }
  0x2e   :  { %196 = vmatpush.xpose.msk.msra.mxu0 %vm34_vm0, %v20_v14 }
  0x32   :  { %197 = vmatpush.xpose.msk.msra.mxu0 %vm34_vm0, %v19_v15 }
  0x36   :  { %198 = vmatpush.xpose.msk.msra.mxu0 %vm34_vm0, %v18_v16 }
  0x3a   :  { %199 = vmatpush.xpose.msk.msra.mxu0 %vm34_vm0, %v17_v17 }
  0x3e   :  { %200 = vmatpush.xpose.msk.msra.mxu0 %vm34_vm0, %v16_v18 }
  0x78   :  { %v37_v21 = vpop.xlane.xlu0 %36 }
  0x79   :  { %v38_v22 = vmax.f32 %v37_v21, 1e-24 }
  0x7b   :  { %209 = vrsqrt.f32 %v38_v22  ;;  %vm45_vm2 = vweird.f32 %v38_v22 }
  0x81   :  { %v210_v23 = vpop.eup %209 }
  0x82   :  { %v40_v24 = vmul.f32 %v210_v23, %v38_v22  ;;  %vm46_vm1 = vweird.f32 %v210_v23 }
  0x83   :  { %vm47_vm3 = vmor %vm45_vm2, %vm46_vm1 }
  0x84   :  { %v41_v25 = vmul.f32 %v210_v23, %v40_v24 }
  0x86   :  { %v42_v26 = vmul.f32 0.5, %v41_v25 }
  0x88   :  { %v43_v27 = vsub.f32 1.5, %v42_v26 }
  0x8a   :  { %v44_v28 = vmul.f32 %v210_v23, %v43_v27 }
  0x8b   :  { %v125_v33 = vpop.permute.xlu0 %124 }
  0x8c   :  { %v48_v29 = vsel %vm47_vm3, %v210_v23, %v44_v28  ;;  %vm126_vm4 = vcmp.eq.s32.totalorder %v122_v32, %v125_v33 }
  0x8d   :  { %v49_v30 = vmul.f32 %v48_v29, %v15_v0  ;;  %vm138_vm6 = vmxor %vm126_vm4, %vm244_vm5 }
  0x8e   :  { %vm139_vm8 = vmand %vm127_vm7, %vm138_vm6 }
  0x8f   :  { %201 = vmatmul.msk.f32.vlgmr.msra.gmra.mxu0 %vm34_vm0, %v49_v30 }
 0x10c   :  { %v118_v34 = vpop.f32.mrf.mxu0 }
 0x10d   :  { %v135_v35 = vmul.f32 30.0, %v118_v34  ;;  %v128_v36 = vsel %vm126_vm4, %v118_v34, 0.0 }
 0x10e   :  { %129 = vadd.xlane.f32.xlu1 %v128_v36 }
 0x10f   :  { %v136_v37 = vmul.f32 1.442695, %v135_v35 }
 0x111   :  { %211 = vpow2.f32 %v136_v37 }
 0x117   :  { %v212_v38 = vpop.eup %211 }
 0x118   :  { %v140_v39 = vsel %vm139_vm8, %v212_v38, 0.0 }
 0x119   :  { %141 = vadd.xlane.f32.xlu1 %v140_v39 }
 0x181   :  { %v130_v42 = vpop.xlane.xlu1 %129 }
 0x182   :  { %v133_v43 = vsub.f32 %v130_v42, %v132_v41 }
 0x184   :  { %v134_v44 = vmul.f32 30.0, %v133_v43 }
 0x186   :  { %v143_v45 = vmul.f32 1.442695, %v134_v44 }
 0x188   :  { %213 = vpow2.f32 %v143_v45 }
 0x18c   :  { %v142_v47 = vpop.xlane.xlu1 %141 }
 0x18e   :  { %v214_v46 = vpop.eup %213 }
 0x18f   :  { %v145_v48 = vadd.f32 %v214_v46, %v142_v47 }
 0x191   :  { %215 = vlog2.f32 %v145_v48 }
 0x197   :  { %v216_v49 = vpop.eup %215 }
 0x198   :  { %v147_v50 = vmul.f32 0.6931472, %v216_v49 }
 0x19a   :  { %v148_v51 = vsub.f32 %v134_v44, %v147_v50 }
 0x19c   :  { %v157_v52 = vsel %vm156_vm10, %v148_v51, 0.0 }
 0x19d   :  { %158 = vadd.xlane.f32.xlu2 %v157_v52 }
 0x210   :  { %v159_v53 = vpop.xlane.xlu2 %158 }
 0x211   :  { %v160_v54 = vrot.slane %v159_v53, 4 }
 0x213   :  { %v161_v55 = vadd.f32 %v160_v54, %v159_v53 }
 0x215   :  { %v162_v56 = vrot.slane %v161_v55, 2 }
 0x217   :  { %v163_v57 = vadd.f32 %v162_v56, %v161_v55 }
 0x219   :  { %v164_v58 = vrot.slane %v163_v57, 1 }
 0x21b   :  { %v165_v59 = vadd.f32 %v164_v58, %v163_v57 }
 0x21d   :  { %202 = vpush %v165_v59 }
 0x24e   :  { %s203_s22 = spop %202 }
 0x24f   :  { %v167_v60 = vstv %s203_s22 }
 0x250   :  { %168 = vst [vmem:[#allocation2] sm:$0xff] %v167_v60 }
 0x251   :  { %179 = dma.vmem_to_hbm [thread:$0]  %s175_s2, 128, %s177_s21, [#allocation3]  }
 0x252   :  { %241 = dma.done.wait [#allocation3], 128  }
 0x253   :  { %242 = vsyncadd [#allocation3], 4294967168 }
 0x254   :  { %184 = vsyncpa [#allocation3], 1 }

</bundles_post_ra>
